<compile_context>
chip_gen: v7x
topology: tpu7x:2x2x1
jax: 0.10.0
libtpu: 0.0.40
codegen_flags: <defaults>
</compile_context>

<pallas_src>
import functools

import jax
import jax.numpy as jnp
from jax.experimental import pallas as pl
from jax.experimental.pallas import tpu as pltpu


def _gem_kernel(p_ref, x_ref, o_ref, *, eps):
    """One row tile: rows = (n, c) pairs, lanes = flattened H*W."""
    p = p_ref[0]                          # scalar param from SMEM (read once)
    inv_p = 1.0 / p                       # hoisted scalar math
    x = x_ref[...].astype(jnp.float32)    # upcast (bf16 stays bf16 in HBM/VMEM)
    xc = jnp.maximum(x, eps)              # clamp(min=eps)  (xc > 0)
    xp = jnp.exp(p * jnp.log(xc))         # x^p with a traced float exponent
    m = jnp.mean(xp, axis=-1, keepdims=True)   # avg_pool2d over (H, W)
    y = jnp.exp(jnp.log(m) * inv_p)            # m^(1/p)
    o_ref[...] = y.astype(o_ref.dtype)


def gem_pallas(x, p, eps=1e-6, target_block_bytes=4 * 1024 * 1024):
    """x: (N, C, H, W), p: (1,) scalar param. Returns (N, C, 1, 1)."""
    N, C, H, W = x.shape
    R = N * C
    HW = H * W
    x2 = x.reshape(R, HW)                      # contiguous view, no HBM copy
    itemsize = jnp.dtype(x.dtype).itemsize

    # ---- Row-tile selection: biggest multiple-of-8 tile within the budget. ----
    row_bytes = HW * itemsize
    tr = max(1, target_block_bytes // max(row_bytes, 1))
    tr = max(8, (tr // 8) * 8)                 # sublane-aligned, never < 8
    if R <= tr:
        TR = R                                 # one block; full-dim block is always legal
    else:
        TR = tr                                # multiple of 8; ragged last block is masked
    grid_r = pl.cdiv(R, TR)
    # TODO(synk): for very large H*W (single row >> block budget) add a second
    # "arbitrary" grid axis over HW with a partial-sum accumulator; not needed
    # at these shapes (fallback here is simply TR=8).

    # ---- Compiler params: raise scoped-VMEM limit only if the tile needs it. ----
    vmem_need = 2 * TR * HW * itemsize + 2 * TR * itemsize + (1 << 20)
    cp_kwargs = dict(dimension_semantics=("parallel",))
    if vmem_need > (16 << 20):                 # above v5e's default scoped VMEM
        cp_kwargs["vmem_limit_bytes"] = int(vmem_need)
    compiler_params = pltpu.CompilerParams(**cp_kwargs)

    cost = pl.CostEstimate(
        flops=3 * R * HW,
        transcendentals=2 * R * HW + 2 * R,    # log+exp per element (+ per-row finalize)
        bytes_accessed=R * HW * itemsize + R * itemsize,
    )

    out = pl.pallas_call(
        functools.partial(_gem_kernel, eps=float(eps)),
        out_shape=jax.ShapeDtypeStruct((R, 1), x.dtype),
        grid=(grid_r,),
        in_specs=[
            pl.BlockSpec(memory_space=pltpu.MemorySpace.SMEM),   # p (scalar param)
            pl.BlockSpec((TR, HW), lambda i: (i, 0)),            # x row tile
        ],
        out_specs=pl.BlockSpec((TR, 1), lambda i: (i, 0)),
        compiler_params=compiler_params,
        cost_estimate=cost,
    )(p.astype(jnp.float32), x2)

    return out.reshape(N, C, 1, 1)


def gem_reference(x, p, eps=1e-6):
    xc = jnp.maximum(x, eps)
    xp = xc ** p[0]
    m = jnp.mean(xp, axis=(-2, -1), keepdims=True)
    return m ** (1.0 / p[0])


if __name__ == "__main__":
    key = jax.random.PRNGKey(0)
    N, C, H, W = 2, 4, 16, 16
    x = jax.random.normal(key, (N, C, H, W), dtype=jnp.float32)

    # Deterministic parameter init, matching GeM.__init__ (p = ones(1) * 3).
    p_param = jnp.ones((1,), dtype=jnp.float32) * 3.0
    eps = 1e-6

    y = gem_pallas(x, p_param, eps=eps)
    y = jax.block_until_ready(y)
    y_ref = gem_reference(x, p_param, eps=eps)
    assert y.shape == (N, C, 1, 1), y.shape
    assert jnp.allclose(y, y_ref, rtol=1e-4, atol=1e-6), (
        float(jnp.max(jnp.abs(y - y_ref))))

    # Second case: exercises a multi-block grid with a ragged (unpadded) last
    # row block (R = 21 rows, TR = 8, grid = 3).
    x_b = jax.random.normal(jax.random.PRNGKey(1), (3, 7, 8, 8), dtype=jnp.float32)
    y_b = jax.block_until_ready(
        gem_pallas(x_b, p_param, eps=eps, target_block_bytes=8 * 256))
    y_b_ref = gem_reference(x_b, p_param, eps=eps)
    assert y_b.shape == (3, 7, 1, 1), y_b.shape
    assert jnp.allclose(y_b, y_b_ref, rtol=1e-4, atol=1e-6), (
        float(jnp.max(jnp.abs(y_b - y_b_ref))))

    print("KERNEL_OK")
</pallas_src>

<mosaic_0001>
module attributes {stable_mosaic.version = 11 : i64} {
  func.func @_gem_kernel(%arg0: i32, %arg1: memref<1xf32, #tpu.memory_space<smem>>, %arg2: memref<8x256xf32, #tpu.memory_space<vmem>>, %arg3: memref<8x1xf32, #tpu.memory_space<vmem>>) attributes {dimension_semantics = [#tpu.dimension_semantics<parallel>], iteration_bounds = array<i64: 1>, scalar_prefetch = 0 : i64, scratch_operands = 0 : i64, tpu.core_type = #tpu.core_type<tc>, window_params = [{transform_indices = @transform_0, window_bounds = array<i64: 1>}, {transform_indices = @transform_1, window_bounds = array<i64: 8, 256>}, {transform_indices = @transform_2, window_bounds = array<i64: 8, 1>}]} {
    %c0 = arith.constant 0 : index
    %0 = memref.load %arg1[%c0] : memref<1xf32, #tpu.memory_space<smem>>
    %cst = arith.constant 1.000000e+00 : f32
    %1 = arith.divf %cst, %0 : f32
    %c0_0 = arith.constant 0 : index
    %c0_1 = arith.constant 0 : index
    %2 = vector.load %arg2[%c0_0, %c0_1] : memref<8x256xf32, #tpu.memory_space<vmem>>, vector<8x256xf32>
    %cst_2 = arith.constant 9.99999997E-7 : f32
    %3 = vector.broadcast %cst_2 : f32 to vector<8x256xf32>
    %4 = arith.maximumf %2, %3 : vector<8x256xf32>
    %5 = math.log %4 : vector<8x256xf32>
    %6 = vector.broadcast %0 : f32 to vector<8x256xf32>
    %7 = arith.mulf %6, %5 : vector<8x256xf32>
    %8 = math.exp %7 : vector<8x256xf32>
    %cst_3 = arith.constant dense<0.000000e+00> : vector<8xf32>
    %9 = vector.multi_reduction <add>, %8, %cst_3 [1] : vector<8x256xf32> to vector<8xf32>
    %10 = vector.shape_cast %9 : vector<8xf32> to vector<8x1xf32>
    %cst_4 = arith.constant 2.560000e+02 : f32
    %11 = vector.broadcast %cst_4 : f32 to vector<8x1xf32>
    %12 = arith.divf %10, %11 : vector<8x1xf32>
    %13 = math.log %12 : vector<8x1xf32>
    %14 = vector.broadcast %1 : f32 to vector<8x1xf32>
    %15 = arith.mulf %13, %14 : vector<8x1xf32>
    %16 = math.exp %15 : vector<8x1xf32>
    %c0_5 = arith.constant 0 : index
    %c0_6 = arith.constant 0 : index
    %17 = vector.load %arg3[%c0_5, %c0_6] : memref<8x1xf32, #tpu.memory_space<vmem>>, vector<8x1xf32>
    tpu.vector_store %arg3[%c0_5, %c0_6], %16 {strides = array<i32>} : memref<8x1xf32, #tpu.memory_space<vmem>>, vector<8x1xf32>,
    return
  }
  func.func @transform_0(%arg0: i32) -> i32 {
    %c0_i32 = arith.constant 0 : i32
    %c0_i32_0 = arith.constant 0 : i32
    return %c0_i32 : i32
  }
  func.func @transform_1(%arg0: i32) -> (i32, i32) {
    %c0_i32 = arith.constant 0 : i32
    %c0_i32_0 = arith.constant 0 : i32
    return %arg0, %c0_i32 : i32, i32
  }
  func.func @transform_2(%arg0: i32) -> (i32, i32) {
    %c0_i32 = arith.constant 0 : i32
    %c0_i32_0 = arith.constant 0 : i32
    return %arg0, %c0_i32 : i32, i32
  }
}

</mosaic_0001>

<bundles_post_ra>
// kernel: tpu_custom_call.1
= control target key start
LH: loop header
LB: loop body
LE: loop exit
PB: predicated region body
PF: predicated region fallthrough
CT: control target
= control target key end

     0   :  { %8 = vsyncpa [#allocation4], 0  ;;  %s102_s9 = smov [#allocation3]   ;;  %s136_s0 = inlined_call_operand.<no memory space> [shape: f32[1], index: 0, kind: input, shape index: {}]   ;;  %s137_s1 = inlined_call_operand.hbm [shape: f32[8,256], index: 1, kind: input, shape index: {}]   ;;  %s138_s2 = inlined_call_operand.vmem [shape: f32[8,1], index: 2, kind: output, shape index: {}]  }
   0x1   :  { %s17_s10 = sshll.u32 %s102_s9, 4  ;;  %s78_s13 = scalar_lea.hbm %s137_s1, 256  ;;  %s18_s10 = int_to_ptr.vmem [resolvable:$true] %s17_s10 }
   0x2   :  { %p79_p0 = scmp.ne.s32.totalorder %s137_s1, %s78_s13  ;;  %p82_p1 = scmp.lt.u32.totalorder %s78_s13, %s137_s1 }
   0x4   :  { %p84_p2 = pnand %p82_p1, %p79_p0 }
   0x6   :  { %87 = shalt.err (!%p84_p2)
}
   0x7   :  { %s88_s18 = scalar_lea.vmem %s18_s10, 256  ;;  %p93_p4 = scmp.lt.s32.totalorder %s18_s10, %s18_s10 }
   0x8   :  { %p89_p3 = scmp.ne.s32.totalorder %s18_s10, %s88_s18  ;;  %p94_p5 = scmp.lt.s32.totalorder %s88_s18, %s88_s18 }
   0xa   :  { %p95_p6 = por %p94_p5, %p93_p4 }
   0xc   :  { %p96_p7 = pnand %p95_p6, %p89_p3 }
   0xe   :  { %99 = shalt.err (!%p96_p7)
}
   0xf   :  { %20 = dma.hbm_to_vmem [thread:$0]  %s137_s1, 256, %s18_s10, [#allocation4]  }
  0x10   :  { %100 = dma.done.wait [#allocation4], 256  }
  0x11   :  { %101 = vsyncadd [#allocation4], 4294967040  ;;  %v25_v0 = vstv %s136_s0  ;;  %v28_v1 = vld [vmem:[#allocation3] sm:$0xff]  ;;  %v29_v2 = vld [vmem:[#allocation3 + $0x8] sm:$0xff]  ;;  %vm54_vm0 = vcmask 7168  }
  0x12   :  { %64 = vrcp.f32 %v25_v0  ;;  %v30_v3 = vmax.f32 %v28_v1, 1e-06  ;;  %v31_v4 = vmax.f32 %v29_v2, 1e-06 }
  0x14   :  { %66 = vlog2.f32 %v30_v3 }
  0x15   :  { %68 = vlog2.f32 %v31_v4 }
  0x1c   :  { %v65_v5 = vpop.eup %64 }
  0x1d   :  { %61 = vpush %v65_v5 }
  0x1e   :  { %v67_v6 = vpop.eup %66 }
  0x1f   :  { %v69_v7 = vpop.eup %68  ;;  %v33_v8 = vmul.f32 0.6931472, %v67_v6 }
  0x20   :  { %v35_v9 = vmul.f32 0.6931472, %v69_v7 }
  0x21   :  { %v37_v10 = vmul.f32 %v33_v8, %v25_v0 }
  0x22   :  { %v38_v11 = vmul.f32 %v35_v9, %v25_v0 }
  0x23   :  { %v39_v12 = vmul.f32 1.442695, %v37_v10 }
  0x24   :  { %v41_v13 = vmul.f32 1.442695, %v38_v11 }
  0x25   :  { %70 = vpow2.f32 %v39_v12 }
  0x26   :  { %72 = vpow2.f32 %v41_v13 }
  0x2f   :  { %v71_v14 = vpop.eup %70 }
  0x30   :  { %v73_v15 = vpop.eup %72 }
  0x31   :  { %v43_v16 = vadd.f32 %v73_v15, %v71_v14 }
  0x33   :  { %44 = vadd.xlane.f32.xlu0 %v43_v16 }
  0x4e   :  { %s62_s0 = spop %61 }
  0x4f   :  { %v50_v20 = vstv %s62_s0 }
  0xc0   :  { %v45_v17 = vpop.xlane.xlu0 %44 }
  0xc1   :  { %v47_v18 = vmul.f32 0.00390625, %v45_v17 }
  0xc3   :  { %74 = vlog2.f32 %v47_v18 }
  0xcd   :  { %v75_v19 = vpop.eup %74 }
  0xce   :  { %v49_v21 = vmul.f32 0.6931472, %v75_v19 }
  0xd0   :  { %v51_v22 = vmul.f32 %v50_v20, %v49_v21 }
  0xd2   :  { %v52_v23 = vmul.f32 1.442695, %v51_v22 }
  0xd4   :  { %76 = vpow2.f32 %v52_v23 }
  0xde   :  { %v77_v24 = vpop.eup %76 }
  0xdf   :  { %55 = vst.msk [vmem:[%s138_s2] sm:$0xff] %vm54_vm0, %v77_v24 }
  0xe0   :  { %60 = vsyncpa [#allocation4], 1 }

</bundles_post_ra>
